<compile_context>
chip_gen: v5e
topology: v5e:2x2
jax: 0.10.0
libtpu: 0.0.40
codegen_flags: <defaults>
</compile_context>

<pallas_src>
import jax
import jax.numpy as jnp
from jax import lax
from jax.experimental import pallas as pl
from jax.experimental.pallas import tpu as pltpu


# ----------------------------- Pallas kernel ------------------------------

def lstm_ad_kernel(x_ref,      # (seq, feats)
                   w_ref,      # (feats, 9*feats)  = [Whh2 | Wih2 | Wfc]
                   v_ref,      # (1, 7*feats)      = [b2 | bfc | h2_0 | c2_0]
                   out_ref):   # (seq, feats)
    seq, feats = x_ref.shape
    f4 = 4 * feats

    # One-time unpack of the packed slabs (static lane slices, outside the loop).
    w = w_ref[...]
    whh = w[:, 0:f4]                      # (feats, 4*feats)
    wih = w[:, f4:2 * f4]                 # (feats, 4*feats)
    wfc = w[:, 2 * f4:2 * f4 + feats]     # (feats, feats)

    v = v_ref[...]
    b2 = v[:, 0:f4]                       # (1, 4*feats)
    bfc = v[:, f4:f4 + feats]             # (1, feats)
    h = v[:, f4 + feats:f4 + 2 * feats]   # (1, feats)  initial h2
    c = v[:, f4 + 2 * feats:f4 + 3 * feats]  # (1, feats)  initial c2

    # Hoisted batched input projection with the bias folded in: (seq, 4*feats).
    xw = jnp.dot(x_ref[...], wih, preferred_element_type=jnp.float32) + b2

    # NOTE: the PyTorch forward also runs self.lstm (feats -> 64), but lstm2
    # consumes the raw input and lstm1's output is discarded, so that path is
    # intentionally not computed here (returned tensor is identical).

    # Fully unrolled recurrence: seq is a small, static trace-time constant.
    # Per-step h rows stay in vregs (no VMEM scratch round-trip).
    hs = []
    for t in range(seq):
        gates = xw[t:t + 1, :] + jnp.dot(h, whh,
                                         preferred_element_type=jnp.float32)
        # Whole-tensor activations (2 EUP ops), gate order i, f, g, o.
        sig_g = jax.nn.sigmoid(gates)
        tanh_g = jnp.tanh(gates)
        i = sig_g[:, 0 * feats:1 * feats]
        f = sig_g[:, 1 * feats:2 * feats]
        g = tanh_g[:, 2 * feats:3 * feats]
        o = sig_g[:, 3 * feats:4 * feats]
        c = f * c + i * g
        h = o * jnp.tanh(c)
        hs.append(h)

    # Batched FCN head: one (seq,feats)@(feats,feats) matmul on the collected
    # rows, then a single contiguous store of the whole output.
    h2_all = jnp.concatenate(hs, axis=0)                     # (seq, feats)
    y = 2.0 * jax.nn.sigmoid(
        jnp.dot(h2_all, wfc, preferred_element_type=jnp.float32) + bfc)
    out_ref[...] = y.astype(out_ref.dtype)


# ------------------------------- wrapper -----------------------------------

def lstm_ad_forward(x, params, hidden0):
    seq, feats = x.shape
    # LSTM1 parameters / state are accepted but not passed to the kernel: the
    # PyTorch forward discards that path's output, so it never affects `out`.
    _wih1, _whh1, _b1, wih2, whh2, b2, wfc, bfc = params
    _h1_0, _c1_0, h2_0, c2_0 = hidden0

    # Pack the 8 tiny operands into 2 lane-dense slabs -> 3 input DMAs total.
    w_slab = jnp.concatenate([whh2, wih2, wfc], axis=1)       # (feats, 9*feats)
    v_slab = jnp.concatenate([b2, bfc, h2_0, c2_0], axis=1)   # (1, 7*feats)

    vmem = pl.BlockSpec(memory_space=pltpu.MemorySpace.VMEM)
    return pl.pallas_call(
        lstm_ad_kernel,
        out_shape=jax.ShapeDtypeStruct((seq, feats), jnp.float32),
        in_specs=[vmem, vmem, vmem],
        out_specs=vmem,
    )(x, w_slab, v_slab)


# ------------------------ deterministic parameters --------------------------

def make_params(key, feats, hidden):
    """Build all module params (both LSTMs + FCN) in fused-gate layout.

    PyTorch nn.LSTM stores W_ih/W_hh as (4*out, in) with gate rows [i; f; g; o].
    Transposing gives (in, 4*out) with the same gate order along columns, so a
    single x @ W produces all gates lane-dense, sliceable with static slices.
    """
    ks = jax.random.split(key, 10)

    def u(k, shape, bound):
        return jax.random.uniform(k, shape, jnp.float32, -bound, bound)

    k1 = 1.0 / jnp.sqrt(hidden)
    W_ih1 = u(ks[0], (4 * hidden, feats), k1)
    W_hh1 = u(ks[1], (4 * hidden, hidden), k1)
    b_ih1 = u(ks[2], (4 * hidden,), k1)
    b_hh1 = u(ks[3], (4 * hidden,), k1)

    k2 = 1.0 / jnp.sqrt(feats)
    W_ih2 = u(ks[4], (4 * feats, feats), k2)
    W_hh2 = u(ks[5], (4 * feats, feats), k2)
    b_ih2 = u(ks[6], (4 * feats,), k2)
    b_hh2 = u(ks[7], (4 * feats,), k2)

    W_fc = u(ks[8], (feats, feats), k2)
    b_fc = u(ks[9], (feats,), k2)

    wih1 = W_ih1.T                                 # (feats, 4*hidden)
    whh1 = W_hh1.T                                 # (hidden, 4*hidden)
    b1 = (b_ih1 + b_hh1).reshape(1, 4 * hidden)

    wih2 = W_ih2.T                                 # (feats, 4*feats)
    whh2 = W_hh2.T                                 # (feats, 4*feats)
    b2 = (b_ih2 + b_hh2).reshape(1, 4 * feats)

    wfc = W_fc.T                                   # (feats, feats)
    bfc = b_fc.reshape(1, feats)
    return (wih1, whh1, b1, wih2, whh2, b2, wfc, bfc)


def make_hidden(key, feats, hidden):
    kh1, kc1, kh2, kc2 = jax.random.split(key, 4)
    h1_0 = jax.random.uniform(kh1, (1, hidden), jnp.float32)   # torch.rand
    c1_0 = jax.random.normal(kc1, (1, hidden), jnp.float32)    # torch.randn
    h2_0 = jax.random.uniform(kh2, (1, feats), jnp.float32)
    c2_0 = jax.random.normal(kc2, (1, feats), jnp.float32)
    return (h1_0, c1_0, h2_0, c2_0)


# ------------------------ pure-JAX reference check --------------------------

def lstm_ad_reference(x, params, hidden0):
    """Faithful (un-optimized) mirror of the PyTorch forward, including the
    discarded LSTM1 recurrence — used to verify the optimized kernel."""
    wih1, whh1, b1, wih2, whh2, b2, wfc, bfc = params

    def lstm(x_t, h, c, wih, whh, b):
        n = h.shape[-1]
        gates = x_t @ wih + h @ whh + b
        i = jax.nn.sigmoid(gates[:, 0 * n:1 * n])
        f = jax.nn.sigmoid(gates[:, 1 * n:2 * n])
        g = jnp.tanh(gates[:, 2 * n:3 * n])
        o = jax.nn.sigmoid(gates[:, 3 * n:4 * n])
        c_new = f * c + i * g
        return o * jnp.tanh(c_new), c_new

    def step(carry, x_row):
        h1, c1, h2, c2 = carry
        x_t = x_row[None, :]
        h1, c1 = lstm(x_t, h1, c1, wih1, whh1, b1)   # output discarded (as in PyTorch)
        h2, c2 = lstm(x_t, h2, c2, wih2, whh2, b2)
        y = 2.0 * jax.nn.sigmoid(h2 @ wfc + bfc)
        return (h1, c1, h2, c2), y[0]

    _, ys = lax.scan(step, hidden0, x)
    return ys


# --------------------------------- main -------------------------------------

if __name__ == "__main__":
    SEQ, FEATS, HIDDEN = 8, 8, 64

    root = jax.random.PRNGKey(0)
    kx, kp, kh = jax.random.split(root, 3)

    x = jax.random.normal(kx, (SEQ, FEATS), jnp.float32)
    params = make_params(kp, FEATS, HIDDEN)
    hidden0 = make_hidden(kh, FEATS, HIDDEN)

    out = jax.block_until_ready(lstm_ad_forward(x, params, hidden0))

    ref = jax.block_until_ready(lstm_ad_reference(x, params, hidden0))
    assert out.shape == (SEQ, FEATS)
    assert jnp.allclose(out, ref, atol=1e-3, rtol=1e-3), "kernel vs reference mismatch"

    print("KERNEL_OK")
</pallas_src>

<mosaic_0001>
module attributes {stable_mosaic.version = 11 : i64} {
  func.func @lstm_ad_kernel(%arg0: memref<8x8xf32, #tpu.memory_space<vmem>>, %arg1: memref<8x72xf32, #tpu.memory_space<vmem>>, %arg2: memref<1x56xf32, #tpu.memory_space<vmem>>, %arg3: memref<8x8xf32, #tpu.memory_space<vmem>>) attributes {dimension_semantics = [], scalar_prefetch = 0 : i64, scratch_operands = 0 : i64, tpu.core_type = #tpu.core_type<tc>} {
    %c0 = arith.constant 0 : index
    %c0_0 = arith.constant 0 : index
    %0 = vector.load %arg1[%c0, %c0_0] : memref<8x72xf32, #tpu.memory_space<vmem>>, vector<8x72xf32>
    %1 = vector.extract_strided_slice %0 {offsets = [0, 0], sizes = [8, 32], strides = [1, 1]} : vector<8x72xf32> to vector<8x32xf32>
    %2 = vector.extract_strided_slice %0 {offsets = [0, 32], sizes = [8, 32], strides = [1, 1]} : vector<8x72xf32> to vector<8x32xf32>
    %3 = vector.extract_strided_slice %0 {offsets = [0, 64], sizes = [8, 8], strides = [1, 1]} : vector<8x72xf32> to vector<8x8xf32>
    %c0_1 = arith.constant 0 : index
    %c0_2 = arith.constant 0 : index
    %4 = vector.load %arg2[%c0_1, %c0_2] : memref<1x56xf32, #tpu.memory_space<vmem>>, vector<1x56xf32>
    %5 = vector.extract_strided_slice %4 {offsets = [0, 0], sizes = [1, 32], strides = [1, 1]} : vector<1x56xf32> to vector<1x32xf32>
    %6 = vector.extract_strided_slice %4 {offsets = [0, 32], sizes = [1, 8], strides = [1, 1]} : vector<1x56xf32> to vector<1x8xf32>
    %7 = vector.extract_strided_slice %4 {offsets = [0, 40], sizes = [1, 8], strides = [1, 1]} : vector<1x56xf32> to vector<1x8xf32>
    %8 = vector.extract_strided_slice %4 {offsets = [0, 48], sizes = [1, 8], strides = [1, 1]} : vector<1x56xf32> to vector<1x8xf32>
    %c0_3 = arith.constant 0 : index
    %c0_4 = arith.constant 0 : index
    %9 = vector.load %arg0[%c0_3, %c0_4] : memref<8x8xf32, #tpu.memory_space<vmem>>, vector<8x8xf32>
    %cst = arith.constant dense<0.000000e+00> : vector<8x32xf32>
    %10 = tpu.matmul %9, %2, %cst {dimension_numbers = #tpu.dot_dimension_numbers<[1], [0], [0], [1], [0, 0, 1, 1], [], []>} : vector<8x8xf32>, vector<8x32xf32>, vector<8x32xf32> -> vector<8x32xf32>
    %11 = vector.broadcast %5 : vector<1x32xf32> to vector<8x32xf32>
    %12 = arith.addf %10, %11 : vector<8x32xf32>
    %13 = vector.extract_strided_slice %12 {offsets = [0, 0], sizes = [1, 32], strides = [1, 1]} : vector<8x32xf32> to vector<1x32xf32>
    %cst_5 = arith.constant dense<0.000000e+00> : vector<1x32xf32>
    %14 = tpu.matmul %7, %1, %cst_5 {dimension_numbers = #tpu.dot_dimension_numbers<[1], [0], [0], [1], [0, 0, 1, 1], [], []>} : vector<1x8xf32>, vector<8x32xf32>, vector<1x32xf32> -> vector<1x32xf32>
    %15 = arith.addf %13, %14 : vector<1x32xf32>
    %16 = arith.negf %15 : vector<1x32xf32>
    %17 = math.exp %16 : vector<1x32xf32>
    %cst_6 = arith.constant 1.000000e+00 : f32
    %18 = vector.broadcast %cst_6 : f32 to vector<1x32xf32>
    %19 = arith.addf %18, %17 : vector<1x32xf32>
    %20 = arith.divf %18, %19 : vector<1x32xf32>
    %21 = math.tanh %15 : vector<1x32xf32>
    %22 = vector.extract_strided_slice %20 {offsets = [0, 0], sizes = [1, 8], strides = [1, 1]} : vector<1x32xf32> to vector<1x8xf32>
    %23 = vector.extract_strided_slice %20 {offsets = [0, 8], sizes = [1, 8], strides = [1, 1]} : vector<1x32xf32> to vector<1x8xf32>
    %24 = vector.extract_strided_slice %21 {offsets = [0, 16], sizes = [1, 8], strides = [1, 1]} : vector<1x32xf32> to vector<1x8xf32>
    %25 = vector.extract_strided_slice %20 {offsets = [0, 24], sizes = [1, 8], strides = [1, 1]} : vector<1x32xf32> to vector<1x8xf32>
    %26 = arith.mulf %23, %8 : vector<1x8xf32>
    %27 = arith.mulf %22, %24 : vector<1x8xf32>
    %28 = arith.addf %26, %27 : vector<1x8xf32>
    %29 = math.tanh %28 : vector<1x8xf32>
    %30 = arith.mulf %25, %29 : vector<1x8xf32>
    %31 = vector.extract_strided_slice %12 {offsets = [1, 0], sizes = [1, 32], strides = [1, 1]} : vector<8x32xf32> to vector<1x32xf32>
    %cst_7 = arith.constant dense<0.000000e+00> : vector<1x32xf32>
    %32 = tpu.matmul %30, %1, %cst_7 {dimension_numbers = #tpu.dot_dimension_numbers<[1], [0], [0], [1], [0, 0, 1, 1], [], []>} : vector<1x8xf32>, vector<8x32xf32>, vector<1x32xf32> -> vector<1x32xf32>
    %33 = arith.addf %31, %32 : vector<1x32xf32>
    %34 = arith.negf %33 : vector<1x32xf32>
    %35 = math.exp %34 : vector<1x32xf32>
    %cst_8 = arith.constant 1.000000e+00 : f32
    %36 = vector.broadcast %cst_8 : f32 to vector<1x32xf32>
    %37 = arith.addf %36, %35 : vector<1x32xf32>
    %38 = arith.divf %36, %37 : vector<1x32xf32>
    %39 = math.tanh %33 : vector<1x32xf32>
    %40 = vector.extract_strided_slice %38 {offsets = [0, 0], sizes = [1, 8], strides = [1, 1]} : vector<1x32xf32> to vector<1x8xf32>
    %41 = vector.extract_strided_slice %38 {offsets = [0, 8], sizes = [1, 8], strides = [1, 1]} : vector<1x32xf32> to vector<1x8xf32>
    %42 = vector.extract_strided_slice %39 {offsets = [0, 16], sizes = [1, 8], strides = [1, 1]} : vector<1x32xf32> to vector<1x8xf32>
    %43 = vector.extract_strided_slice %38 {offsets = [0, 24], sizes = [1, 8], strides = [1, 1]} : vector<1x32xf32> to vector<1x8xf32>
    %44 = arith.mulf %41, %28 : vector<1x8xf32>
    %45 = arith.mulf %40, %42 : vector<1x8xf32>
    %46 = arith.addf %44, %45 : vector<1x8xf32>
    %47 = math.tanh %46 : vector<1x8xf32>
    %48 = arith.mulf %43, %47 : vector<1x8xf32>
    %49 = vector.extract_strided_slice %12 {offsets = [2, 0], sizes = [1, 32], strides = [1, 1]} : vector<8x32xf32> to vector<1x32xf32>
    %cst_9 = arith.constant dense<0.000000e+00> : vector<1x32xf32>
    %50 = tpu.matmul %48, %1, %cst_9 {dimension_numbers = #tpu.dot_dimension_numbers<[1], [0], [0], [1], [0, 0, 1, 1], [], []>} : vector<1x8xf32>, vector<8x32xf32>, vector<1x32xf32> -> vector<1x32xf32>
    %51 = arith.addf %49, %50 : vector<1x32xf32>
    %52 = arith.negf %51 : vector<1x32xf32>
    %53 = math.exp %52 : vector<1x32xf32>
    %cst_10 = arith.constant 1.000000e+00 : f32
    %54 = vector.broadcast %cst_10 : f32 to vector<1x32xf32>
    %55 = arith.addf %54, %53 : vector<1x32xf32>
    %56 = arith.divf %54, %55 : vector<1x32xf32>
    %57 = math.tanh %51 : vector<1x32xf32>
    %58 = vector.extract_strided_slice %56 {offsets = [0, 0], sizes = [1, 8], strides = [1, 1]} : vector<1x32xf32> to vector<1x8xf32>
    %59 = vector.extract_strided_slice %56 {offsets = [0, 8], sizes = [1, 8], strides = [1, 1]} : vector<1x32xf32> to vector<1x8xf32>
    %60 = vector.extract_strided_slice %57 {offsets = [0, 16], sizes = [1, 8], strides = [1, 1]} : vector<1x32xf32> to vector<1x8xf32>
    %61 = vector.extract_strided_slice %56 {offsets = [0, 24], sizes = [1, 8], strides = [1, 1]} : vector<1x32xf32> to vector<1x8xf32>
    %62 = arith.mulf %59, %46 : vector<1x8xf32>
    %63 = arith.mulf %58, %60 : vector<1x8xf32>
    %64 = arith.addf %62, %63 : vector<1x8xf32>
    %65 = math.tanh %64 : vector<1x8xf32>
    %66 = arith.mulf %61, %65 : vector<1x8xf32>
    %67 = vector.extract_strided_slice %12 {offsets = [3, 0], sizes = [1, 32], strides = [1, 1]} : vector<8x32xf32> to vector<1x32xf32>
    %cst_11 = arith.constant dense<0.000000e+00> : vector<1x32xf32>
    %68 = tpu.matmul %66, %1, %cst_11 {dimension_numbers = #tpu.dot_dimension_numbers<[1], [0], [0], [1], [0, 0, 1, 1], [], []>} : vector<1x8xf32>, vector<8x32xf32>, vector<1x32xf32> -> vector<1x32xf32>
    %69 = arith.addf %67, %68 : vector<1x32xf32>
    %70 = arith.negf %69 : vector<1x32xf32>
    %71 = math.exp %70 : vector<1x32xf32>
    %cst_12 = arith.constant 1.000000e+00 : f32
    %72 = vector.broadcast %cst_12 : f32 to vector<1x32xf32>
    %73 = arith.addf %72, %71 : vector<1x32xf32>
    %74 = arith.divf %72, %73 : vector<1x32xf32>
    %75 = math.tanh %69 : vector<1x32xf32>
    %76 = vector.extract_strided_slice %74 {offsets = [0, 0], sizes = [1, 8], strides = [1, 1]} : vector<1x32xf32> to vector<1x8xf32>
    %77 = vector.extract_strided_slice %74 {offsets = [0, 8], sizes = [1, 8], strides = [1, 1]} : vector<1x32xf32> to vector<1x8xf32>
    %78 = vector.extract_strided_slice %75 {offsets = [0, 16], sizes = [1, 8], strides = [1, 1]} : vector<1x32xf32> to vector<1x8xf32>
    %79 = vector.extract_strided_slice %74 {offsets = [0, 24], sizes = [1, 8], strides = [1, 1]} : vector<1x32xf32> to vector<1x8xf32>
    %80 = arith.mulf %77, %64 : vector<1x8xf32>
    %81 = arith.mulf %76, %78 : vector<1x8xf32>
    %82 = arith.addf %80, %81 : vector<1x8xf32>
    %83 = math.tanh %82 : vector<1x8xf32>
    %84 = arith.mulf %79, %83 : vector<1x8xf32>
    %85 = vector.extract_strided_slice %12 {offsets = [4, 0], sizes = [1, 32], strides = [1, 1]} : vector<8x32xf32> to vector<1x32xf32>
    %cst_13 = arith.constant dense<0.000000e+00> : vector<1x32xf32>
    %86 = tpu.matmul %84, %1, %cst_13 {dimension_numbers = #tpu.dot_dimension_numbers<[1], [0], [0], [1], [0, 0, 1, 1], [], []>} : vector<1x8xf32>, vector<8x32xf32>, vector<1x32xf32> -> vector<1x32xf32>
    %87 = arith.addf %85, %86 : vector<1x32xf32>
    %88 = arith.negf %87 : vector<1x32xf32>
    %89 = math.exp %88 : vector<1x32xf32>
    %cst_14 = arith.constant 1.000000e+00 : f32
    %90 = vector.broadcast %cst_14 : f32 to vector<1x32xf32>
    %91 = arith.addf %90, %89 : vector<1x32xf32>
    %92 = arith.divf %90, %91 : vector<1x32xf32>
    %93 = math.tanh %87 : vector<1x32xf32>
    %94 = vector.extract_strided_slice %92 {offsets = [0, 0], sizes = [1, 8], strides = [1, 1]} : vector<1x32xf32> to vector<1x8xf32>
    %95 = vector.extract_strided_slice %92 {offsets = [0, 8], sizes = [1, 8], strides = [1, 1]} : vector<1x32xf32> to vector<1x8xf32>
    %96 = vector.extract_strided_slice %93 {offsets = [0, 16], sizes = [1, 8], strides = [1, 1]} : vector<1x32xf32> to vector<1x8xf32>
    %97 = vector.extract_strided_slice %92 {offsets = [0, 24], sizes = [1, 8], strides = [1, 1]} : vector<1x32xf32> to vector<1x8xf32>
    %98 = arith.mulf %95, %82 : vector<1x8xf32>
    %99 = arith.mulf %94, %96 : vector<1x8xf32>
    %100 = arith.addf %98, %99 : vector<1x8xf32>
    %101 = math.tanh %100 : vector<1x8xf32>
    %102 = arith.mulf %97, %101 : vector<1x8xf32>
    %103 = vector.extract_strided_slice %12 {offsets = [5, 0], sizes = [1, 32], strides = [1, 1]} : vector<8x32xf32> to vector<1x32xf32>
    %cst_15 = arith.constant dense<0.000000e+00> : vector<1x32xf32>
    %104 = tpu.matmul %102, %1, %cst_15 {dimension_numbers = #tpu.dot_dimension_numbers<[1], [0], [0], [1], [0, 0, 1, 1], [], []>} : vector<1x8xf32>, vector<8x32xf32>, vector<1x32xf32> -> vector<1x32xf32>
    %105 = arith.addf %103, %104 : vector<1x32xf32>
    %106 = arith.negf %105 : vector<1x32xf32>
    %107 = math.exp %106 : vector<1x32xf32>
    %cst_16 = arith.constant 1.000000e+00 : f32
    %108 = vector.broadcast %cst_16 : f32 to vector<1x32xf32>
    %109 = arith.addf %108, %107 : vector<1x32xf32>
    %110 = arith.divf %108, %109 : vector<1x32xf32>
    %111 = math.tanh %105 : vector<1x32xf32>
    %112 = vector.extract_strided_slice %110 {offsets = [0, 0], sizes = [1, 8], strides = [1, 1]} : vector<1x32xf32> to vector<1x8xf32>
    %113 = vector.extract_strided_slice %110 {offsets = [0, 8], sizes = [1, 8], strides = [1, 1]} : vector<1x32xf32> to vector<1x8xf32>
    %114 = vector.extract_strided_slice %111 {offsets = [0, 16], sizes = [1, 8], strides = [1, 1]} : vector<1x32xf32> to vector<1x8xf32>
    %115 = vector.extract_strided_slice %110 {offsets = [0, 24], sizes = [1, 8], strides = [1, 1]} : vector<1x32xf32> to vector<1x8xf32>
    %116 = arith.mulf %113, %100 : vector<1x8xf32>
    %117 = arith.mulf %112, %114 : vector<1x8xf32>
    %118 = arith.addf %116, %117 : vector<1x8xf32>
    %119 = math.tanh %118 : vector<1x8xf32>
    %120 = arith.mulf %115, %119 : vector<1x8xf32>
    %121 = vector.extract_strided_slice %12 {offsets = [6, 0], sizes = [1, 32], strides = [1, 1]} : vector<8x32xf32> to vector<1x32xf32>
    %cst_17 = arith.constant dense<0.000000e+00> : vector<1x32xf32>
    %122 = tpu.matmul %120, %1, %cst_17 {dimension_numbers = #tpu.dot_dimension_numbers<[1], [0], [0], [1], [0, 0, 1, 1], [], []>} : vector<1x8xf32>, vector<8x32xf32>, vector<1x32xf32> -> vector<1x32xf32>
    %123 = arith.addf %121, %122 : vector<1x32xf32>
    %124 = arith.negf %123 : vector<1x32xf32>
    %125 = math.exp %124 : vector<1x32xf32>
    %cst_18 = arith.constant 1.000000e+00 : f32
    %126 = vector.broadcast %cst_18 : f32 to vector<1x32xf32>
    %127 = arith.addf %126, %125 : vector<1x32xf32>
    %128 = arith.divf %126, %127 : vector<1x32xf32>
    %129 = math.tanh %123 : vector<1x32xf32>
    %130 = vector.extract_strided_slice %128 {offsets = [0, 0], sizes = [1, 8], strides = [1, 1]} : vector<1x32xf32> to vector<1x8xf32>
    %131 = vector.extract_strided_slice %128 {offsets = [0, 8], sizes = [1, 8], strides = [1, 1]} : vector<1x32xf32> to vector<1x8xf32>
    %132 = vector.extract_strided_slice %129 {offsets = [0, 16], sizes = [1, 8], strides = [1, 1]} : vector<1x32xf32> to vector<1x8xf32>
    %133 = vector.extract_strided_slice %128 {offsets = [0, 24], sizes = [1, 8], strides = [1, 1]} : vector<1x32xf32> to vector<1x8xf32>
    %134 = arith.mulf %131, %118 : vector<1x8xf32>
    %135 = arith.mulf %130, %132 : vector<1x8xf32>
    %136 = arith.addf %134, %135 : vector<1x8xf32>
    %137 = math.tanh %136 : vector<1x8xf32>
    %138 = arith.mulf %133, %137 : vector<1x8xf32>
    %139 = vector.extract_strided_slice %12 {offsets = [7, 0], sizes = [1, 32], strides = [1, 1]} : vector<8x32xf32> to vector<1x32xf32>
    %cst_19 = arith.constant dense<0.000000e+00> : vector<1x32xf32>
    %140 = tpu.matmul %138, %1, %cst_19 {dimension_numbers = #tpu.dot_dimension_numbers<[1], [0], [0], [1], [0, 0, 1, 1], [], []>} : vector<1x8xf32>, vector<8x32xf32>, vector<1x32xf32> -> vector<1x32xf32>
    %141 = arith.addf %139, %140 : vector<1x32xf32>
    %142 = arith.negf %141 : vector<1x32xf32>
    %143 = math.exp %142 : vector<1x32xf32>
    %cst_20 = arith.constant 1.000000e+00 : f32
    %144 = vector.broadcast %cst_20 : f32 to vector<1x32xf32>
    %145 = arith.addf %144, %143 : vector<1x32xf32>
    %146 = arith.divf %144, %145 : vector<1x32xf32>
    %147 = math.tanh %141 : vector<1x32xf32>
    %148 = vector.extract_strided_slice %146 {offsets = [0, 0], sizes = [1, 8], strides = [1, 1]} : vector<1x32xf32> to vector<1x8xf32>
    %149 = vector.extract_strided_slice %146 {offsets = [0, 8], sizes = [1, 8], strides = [1, 1]} : vector<1x32xf32> to vector<1x8xf32>
    %150 = vector.extract_strided_slice %147 {offsets = [0, 16], sizes = [1, 8], strides = [1, 1]} : vector<1x32xf32> to vector<1x8xf32>
    %151 = vector.extract_strided_slice %146 {offsets = [0, 24], sizes = [1, 8], strides = [1, 1]} : vector<1x32xf32> to vector<1x8xf32>
    %152 = arith.mulf %149, %136 : vector<1x8xf32>
    %153 = arith.mulf %148, %150 : vector<1x8xf32>
    %154 = arith.addf %152, %153 : vector<1x8xf32>
    %155 = math.tanh %154 : vector<1x8xf32>
    %156 = arith.mulf %151, %155 : vector<1x8xf32>
    %157 = tpu.concatenate %30, %48, %66, %84, %102, %120, %138, %156 in 0 : vector<1x8xf32>, vector<1x8xf32>, vector<1x8xf32>, vector<1x8xf32>, vector<1x8xf32>, vector<1x8xf32>, vector<1x8xf32>, vector<1x8xf32> -> vector<8x8xf32>
    %cst_21 = arith.constant dense<0.000000e+00> : vector<8x8xf32>
    %158 = tpu.matmul %157, %3, %cst_21 {dimension_numbers = #tpu.dot_dimension_numbers<[1], [0], [0], [1], [0, 0, 1, 1], [], []>} : vector<8x8xf32>, vector<8x8xf32>, vector<8x8xf32> -> vector<8x8xf32>
    %159 = vector.broadcast %6 : vector<1x8xf32> to vector<8x8xf32>
    %160 = arith.addf %158, %159 : vector<8x8xf32>
    %161 = arith.negf %160 : vector<8x8xf32>
    %162 = math.exp %161 : vector<8x8xf32>
    %cst_22 = arith.constant 1.000000e+00 : f32
    %163 = vector.broadcast %cst_22 : f32 to vector<8x8xf32>
    %164 = arith.addf %163, %162 : vector<8x8xf32>
    %165 = arith.divf %163, %164 : vector<8x8xf32>
    %cst_23 = arith.constant 2.000000e+00 : f32
    %166 = vector.broadcast %cst_23 : f32 to vector<8x8xf32>
    %167 = arith.mulf %166, %165 : vector<8x8xf32>
    %c0_24 = arith.constant 0 : index
    %c0_25 = arith.constant 0 : index
    %168 = vector.load %arg3[%c0_24, %c0_25] : memref<8x8xf32, #tpu.memory_space<vmem>>, vector<8x8xf32>
    tpu.vector_store %arg3[%c0_24, %c0_25], %167 {strides = array<i32>} : memref<8x8xf32, #tpu.memory_space<vmem>>, vector<8x8xf32>,
    return
  }
}

</mosaic_0001>

<bundles_post_ra>
// kernel: tpu_custom_call.1
= control target key start
LH: loop header
LB: loop body
LE: loop exit
PB: predicated region body
PF: predicated region fallthrough
CT: control target
= control target key end

     0   :  { %8 = vsyncpa [#allocation3], 0  ;;  %s1007_s0 = inlined_call_operand.hbm [shape: f32[8,8], index: 0, kind: input, shape index: {}]   ;;  %s1008_s1 = inlined_call_operand.hbm [shape: f32[8,72], index: 1, kind: input, shape index: {}]   ;;  %s1009_s2 = inlined_call_operand.vmem [shape: f32[1,56], index: 2, kind: input, shape index: {}]   ;;  %s1010_s3 = inlined_call_operand.hbm [shape: f32[8,8], index: 3, kind: output, shape index: {}]  }
   0x1   :  { %9 = vsyncpa [#allocation6], 0 }
   0x2   :  { %10 = vsyncpa [#allocation4], 0  ;;  %s16_s14 = sshll.u32 %s1007_s0, 4  ;;  %s889_s15 = smov [#allocation2]   ;;  %s17_s14 = int_to_ptr.hbm [resolvable:$true] %s16_s14 }
   0x3   :  { %s18_s16 = sshll.u32 %s889_s15, 4  ;;  %s27_s19 = sshll.u32 %s1008_s1, 4  ;;  %s19_s16 = int_to_ptr.vmem [resolvable:$true] %s18_s16  ;;  %s28_s19 = int_to_ptr.hbm [resolvable:$true] %s27_s19 }
   0x4   :  { %21 = dma.hbm_to_vmem [thread:$0]  %s17_s14, 128, %s19_s16, [#allocation3]  }
   0x5   :  { %s890_s20 = smov [#allocation5]  }
   0x6   :  { %s29_s21 = sshll.u32 %s890_s20, 4  ;;  %s30_s21 = int_to_ptr.vmem [resolvable:$true] %s29_s21 }
   0x7   :  { %32 = dma.hbm_to_vmem [thread:$0]  %s28_s19, 128, %s30_s21, [#allocation6]  }
   0x8   :  { %883 = dma.done.wait [#allocation3], 128  }
   0x9   :  { %884 = vsyncadd [#allocation3], 4294967168 }
   0xa   :  { %885 = dma.done.wait [#allocation6], 128  }
   0xb   :  { %886 = vsyncadd [#allocation6], 4294967168  ;;  %v925_v0 = vld [vmem:[#allocation5] sm:$0xff]  ;;  %s891_s0 = smov 96   ;;  %v938_v1 = vld [vmem:[%s1009_s2] ss:$0 sm:$0xff] }
   0xc   :  { %50 = vrot.lane.b32.xlu0 %v925_v0, %s891_s0  ;;  %96 = vmatpush.msra.mxu1 %v925_v0  ;;  %s892_s23 = smov 88   ;;  %v45_v2 = vld [vmem:[#allocation2] sm:$0xff]  ;;  %vm53_vm0 = vcmask 64512   ;;  %s893_s2 = smov 112   ;;  %vm629_vm13 = vcmask 1040384   ;;  %vm631_vm14 = vcmask 1041408  }
   0xd   :  { %160 = vmatpush.msra.mxu2 %v925_v0  ;;  %230 = vmatpush.msra.mxu3 %v925_v0  ;;  %s894_s24 = smov 8   ;;  %s895_s25 = smov 16  }
   0xe   :  { %370 = vmatpush.msrb.mxu1 %v925_v0  ;;  %s896_s26 = smov 104   ;;  %s897_s27 = smov 64  }
   0xf   :  { %440 = vmatpush.msrb.mxu2 %v925_v0  ;;  %510 = vmatpush.msrb.mxu3 %v925_v0  ;;  %s898_s28 = smov [#allocation7]   ;;  %s702_s5 = sshll.u32 %s1010_s3, 4  ;;  %s703_s5 = int_to_ptr.hbm [resolvable:$true] %s702_s5 }
  0x10   :  { %s700_s29 = sshll.u32 %s898_s28, 4  ;;  %s701_s29 = int_to_ptr.vmem [resolvable:$true] %s700_s29 }
  0x14   :  { %77 = vrot.lane.b32.xlu0 %v938_v1, %s892_s23 }
  0x7e   :  { %v51_v3 = vpop.permute.xlu0 %50 }
  0x7f   :  { %72 = vmatpush.msra.mxu0 %v51_v3 }
  0x80   :  { %713 = vmatmul.msk.f32.vlgmr.msra.gmra.mxu0 %vm53_vm0, %v45_v2 }
  0x81   :  { %300 = vmatpush.msrb.mxu0 %v925_v0 }
  0x83   :  { %580 = vmatpush.msra.mxu0 %v925_v0 }
  0x86   :  { %v78_v4 = vpop.permute.xlu0 %77 }
  0x87   :  { %714 = vmatmul.msk.f32.vlgmr.msra.gmra.mxu1 %vm53_vm0, %v78_v4 }
  0xfd   :  { %v74_v5 = vpop.f32.mrf.mxu0 }
  0xfe   :  { %v946_v6 = vadd.f32 %v938_v1, %v74_v5 }
 0x104   :  { %v98_v7 = vpop.f32.mrf.mxu1 }
 0x105   :  { %v101_v8 = vadd.f32 %v98_v7, %v946_v6 }
 0x107   :  { %743 = vtanh.f32 %v101_v8  ;;  %v715_v10 = vmul.f32 -1.442695, %v101_v8 }
 0x109   :  { %745 = vpow2.f32 %v715_v10 }
 0x10d   :  { %v744_v9 = vpop.eup %743 }
 0x10e   :  { %125 = vrot.lane.b32.xlu1 %v744_v9, %s893_s2 }
 0x10f   :  { %v746_v11 = vpop.eup %745 }
 0x110   :  { %v105_v12 = vadd.f32 1.0, %v746_v11 }
 0x112   :  { %747 = vrcp.f32 %v105_v12  ;;  %v117_v18 = vand.u32 2147483648, %v105_v12  ;;  %vm111_vm2 = vweird.f32 %v105_v12  ;;  %v115_v19 = vand.u32 2147483647, %v105_v12 }
 0x114   :  { %v118_v21 = vor.u32 1.1754944e-38, %v117_v18  ;;  %vm116_vm4 = vcmp.eq.f32.partialorder %v115_v19, 8.507059e+37 }
 0x118   :  { %v748_v13 = vpop.eup %747 }
 0x119   :  { %v107_v14 = vmul.f32 %v748_v13, %v105_v12  ;;  %vm112_vm1 = vweird.f32 %v748_v13 }
 0x11a   :  { %vm113_vm3 = vmor %vm111_vm2, %vm112_vm1 }
 0x11b   :  { %v108_v15 = vsub.f32 1.0, %v107_v14 }
 0x11d   :  { %v109_v16 = vmul.f32 %v748_v13, %v108_v15 }
 0x11f   :  { %v110_v17 = vadd.f32 %v748_v13, %v109_v16 }
 0x121   :  { %v114_v20 = vsel %vm113_vm3, %v748_v13, %v110_v17 }
 0x122   :  { %v119_v23 = vsel %vm116_vm4, %v118_v21, %v114_v20  ;;  %vm633_vm4 = vcmask 1042432  }
 0x123   :  { %v123_v25 = vmul.f32 %v119_v23, %v78_v4 }
 0x180   :  { %v126_v22 = vpop.permute.xlu1 %125 }
 0x181   :  { %v128_v24 = vmul.f32 %v126_v22, %v119_v23 }
 0x183   :  { %130 = vrot.lane.b32.xlu1 %v128_v24, %s894_s24 }
 0x1f5   :  { %v131_v26 = vpop.permute.xlu1 %130 }
 0x1f6   :  { %v133_v27 = vadd.f32 %v131_v26, %v123_v25 }
 0x1f8   :  { %749 = vtanh.f32 %v133_v27  ;;  %v190_v51 = vrot.slane %v133_v27, 7 }
 0x1fe   :  { %v750_v28 = vpop.eup %749 }
 0x1ff   :  { %136 = vrot.lane.b32.xlu2 %v750_v28, %s895_s25 }
 0x259   :  { %v137_v29 = vpop.permute.xlu2 %136 }
 0x25a   :  { %v952_v30 = vmul.f32 %v137_v29, %v119_v23 }
 0x25c   :  { %141 = vrot.lane.b32.xlu2 %v952_v30, %s896_s26 }
 0x2b6   :  { %v142_v31 = vpop.permute.xlu2 %141 }
 0x2b7   :  { %716 = vmatmul.msk.f32.vlgmr.msra.gmra.mxu2 %vm53_vm0, %v142_v31 }
 0x33a   :  { %v162_v32 = vpop.f32.mrf.mxu2 }
 0x33b   :  { %v166_v33 = vrot.slane %v162_v32, 7 }
 0x33d   :  { %v168_v34 = vadd.f32 %v166_v33, %v946_v6 }
 0x33f   :  { %751 = vtanh.f32 %v168_v34  ;;  %v717_v36 = vmul.f32 -1.442695, %v168_v34 }
 0x341   :  { %753 = vpow2.f32 %v717_v36 }
 0x345   :  { %v752_v35 = vpop.eup %751 }
 0x346   :  { %194 = vrot.lane.b32.xlu0 %v752_v35, %s893_s2 }
 0x347   :  { %v754_v37 = vpop.eup %753 }
 0x348   :  { %v172_v38 = vadd.f32 1.0, %v754_v37 }
 0x34a   :  { %755 = vrcp.f32 %v172_v38  ;;  %v184_v44 = vand.u32 2147483648, %v172_v38  ;;  %vm178_vm6 = vweird.f32 %v172_v38  ;;  %v182_v45 = vand.u32 2147483647, %v172_v38 }
 0x34c   :  { %v185_v47 = vor.u32 1.1754944e-38, %v184_v44  ;;  %vm183_vm8 = vcmp.eq.f32.partialorder %v182_v45, 8.507059e+37 }
 0x350   :  { %v756_v39 = vpop.eup %755 }
 0x351   :  { %v174_v40 = vmul.f32 %v756_v39, %v172_v38  ;;  %vm179_vm5 = vweird.f32 %v756_v39 }
 0x352   :  { %vm180_vm7 = vmor %vm178_vm6, %vm179_vm5 }
 0x353   :  { %v175_v41 = vsub.f32 1.0, %v174_v40 }
 0x355   :  { %v176_v42 = vmul.f32 %v756_v39, %v175_v41 }
 0x357   :  { %v177_v43 = vadd.f32 %v756_v39, %v176_v42 }
 0x359   :  { %v181_v46 = vsel %vm180_vm7, %v756_v39, %v177_v43 }
 0x35a   :  { %v186_v49 = vsel %vm183_vm8, %v185_v47, %v181_v46 }
 0x35b   :  { %v192_v52 = vmul.f32 %v190_v51, %v186_v49 }
 0x3b8   :  { %v195_v48 = vpop.permute.xlu0 %194 }
 0x3b9   :  { %v197_v50 = vmul.f32 %v195_v48, %v186_v49 }
 0x3bb   :  { %199 = vrot.lane.b32.xlu1 %v197_v50, %s894_s24 }
 0x42d   :  { %v200_v53 = vpop.permute.xlu1 %199 }
 0x42e   :  { %v202_v54 = vadd.f32 %v200_v53, %v192_v52 }
 0x430   :  { %757 = vtanh.f32 %v202_v54  ;;  %v260_v18 = vrot.slane %v202_v54, 7 }
 0x436   :  { %v758_v55 = vpop.eup %757 }
 0x437   :  { %205 = vrot.lane.b32.xlu2 %v758_v55, %s895_s25 }
 0x491   :  { %v206_v56 = vpop.permute.xlu2 %205 }
 0x492   :  { %v208_v57 = vmul.f32 %v206_v56, %v186_v49 }
 0x494   :  { %v210_v58 = vrot.slane %v208_v57, 1  ;;  %v630_v25 = vsel %vm629_vm13, %v952_v30, %v208_v57 }
 0x496   :  { %211 = vrot.lane.b32.xlu0 %v210_v58, %s896_s26 }
 0x508   :  { %v212_v59 = vpop.permute.xlu0 %211 }
 0x509   :  { %718 = vmatmul.msk.f32.vlgmr.msra.gmra.mxu3 %vm53_vm0, %v212_v59 }
 0x58c   :  { %v232_v60 = vpop.f32.mrf.mxu3 }
 0x58d   :  { %v236_v61 = vrot.slane %v232_v60, 6 }
 0x58f   :  { %v238_v62 = vadd.f32 %v236_v61, %v946_v6 }
 0x591   :  { %759 = vtanh.f32 %v238_v62  ;;  %v719_v2 = vmul.f32 -1.442695, %v238_v62 }
 0x593   :  { %761 = vpow2.f32 %v719_v2 }
 0x597   :  { %v760_v63 = vpop.eup %759 }
 0x598   :  { %264 = vrot.lane.b32.xlu1 %v760_v63, %s893_s2 }
 0x599   :  { %v762_v3 = vpop.eup %761 }
 0x59a   :  { %v242_v4 = vadd.f32 1.0, %v762_v3 }
 0x59c   :  { %763 = vrcp.f32 %v242_v4  ;;  %v254_v11 = vand.u32 2147483648, %v242_v4  ;;  %vm248_vm10 = vweird.f32 %v242_v4  ;;  %v252_v12 = vand.u32 2147483647, %v242_v4 }
 0x59e   :  { %v255_v14 = vor.u32 1.1754944e-38, %v254_v11  ;;  %vm253_vm12 = vcmp.eq.f32.partialorder %v252_v12, 8.507059e+37 }
 0x5a2   :  { %v764_v5 = vpop.eup %763 }
 0x5a3   :  { %v244_v7 = vmul.f32 %v764_v5, %v242_v4  ;;  %vm249_vm9 = vweird.f32 %v764_v5 }
 0x5a4   :  { %vm250_vm11 = vmor %vm248_vm10, %vm249_vm9  ;;  %vm635_vm9 = vcmask 1043456  }
 0x5a5   :  { %v245_v8 = vsub.f32 1.0, %v244_v7 }
 0x5a7   :  { %v246_v9 = vmul.f32 %v764_v5, %v245_v8 }
 0x5a9   :  { %v247_v10 = vadd.f32 %v764_v5, %v246_v9 }
 0x5ab   :  { %v251_v13 = vsel %vm250_vm11, %v764_v5, %v247_v10 }
 0x5ac   :  { %v256_v16 = vsel %vm253_vm12, %v255_v14, %v251_v13 }
 0x5ad   :  { %v262_v19 = vmul.f32 %v260_v18, %v256_v16 }
 0x60a   :  { %v265_v15 = vpop.permute.xlu1 %264 }
 0x60b   :  { %v267_v17 = vmul.f32 %v265_v15, %v256_v16 }
 0x60d   :  { %269 = vrot.lane.b32.xlu2 %v267_v17, %s894_s24 }
 0x667   :  { %v270_v20 = vpop.permute.xlu2 %269 }
 0x668   :  { %v272_v21 = vadd.f32 %v270_v20, %v262_v19 }
 0x66a   :  { %765 = vtanh.f32 %v272_v21  ;;  %v330_v48 = vrot.slane %v272_v21, 7 }
 0x670   :  { %v766_v22 = vpop.eup %765 }
 0x671   :  { %275 = vrot.lane.b32.xlu0 %v766_v22, %s895_s25 }
 0x6e3   :  { %v276_v23 = vpop.permute.xlu0 %275 }
 0x6e4   :  { %v278_v24 = vmul.f32 %v276_v23, %v256_v16 }
 0x6e6   :  { %v280_v26 = vrot.slane %v278_v24, 2  ;;  %v632_v27 = vsel %vm631_vm14, %v630_v25, %v278_v24  ;;  %vm637_vm14 = vcmask 1044480  }
 0x6e8   :  { %281 = vrot.lane.b32.xlu1 %v280_v26, %s896_s26 }
 0x75a   :  { %v282_v28 = vpop.permute.xlu1 %281 }
 0x75b   :  { %720 = vmatmul.msk.f32.vlgmr.msrb.gmra.mxu0 %vm53_vm0, %v282_v28 }
 0x7d8   :  { %v302_v29 = vpop.f32.mrf.mxu0 }
 0x7d9   :  { %v306_v31 = vrot.slane %v302_v29, 5 }
 0x7db   :  { %v308_v32 = vadd.f32 %v306_v31, %v946_v6 }
 0x7dd   :  { %767 = vtanh.f32 %v308_v32  ;;  %v721_v34 = vmul.f32 -1.442695, %v308_v32 }
 0x7df   :  { %769 = vpow2.f32 %v721_v34 }
 0x7e3   :  { %v768_v33 = vpop.eup %767 }
 0x7e4   :  { %334 = vrot.lane.b32.xlu2 %v768_v33, %s893_s2 }
 0x7e5   :  { %v770_v35 = vpop.eup %769 }
 0x7e6   :  { %v312_v36 = vadd.f32 1.0, %v770_v35 }
 0x7e8   :  { %771 = vrcp.f32 %v312_v36  ;;  %v324_v41 = vand.u32 2147483648, %v312_v36  ;;  %vm318_vm1 = vweird.f32 %v312_v36  ;;  %v322_v42 = vand.u32 2147483647, %v312_v36 }
 0x7ea   :  { %v325_v44 = vor.u32 1.1754944e-38, %v324_v41  ;;  %vm323_vm3 = vcmp.eq.f32.partialorder %v322_v42, 8.507059e+37 }
 0x7ee   :  { %v772_v30 = vpop.eup %771 }
 0x7ef   :  { %v314_v37 = vmul.f32 %v772_v30, %v312_v36  ;;  %vm319_vm15 = vweird.f32 %v772_v30 }
 0x7f0   :  { %vm320_vm2 = vmor %vm318_vm1, %vm319_vm15 }
 0x7f1   :  { %v315_v38 = vsub.f32 1.0, %v314_v37 }
 0x7f3   :  { %v316_v39 = vmul.f32 %v772_v30, %v315_v38 }
 0x7f5   :  { %v317_v40 = vadd.f32 %v772_v30, %v316_v39 }
 0x7f7   :  { %v321_v43 = vsel %vm320_vm2, %v772_v30, %v317_v40 }
 0x7f8   :  { %v326_v46 = vsel %vm323_vm3, %v325_v44, %v321_v43 }
 0x7f9   :  { %v332_v49 = vmul.f32 %v330_v48, %v326_v46 }
 0x83e   :  { %v335_v45 = vpop.permute.xlu2 %334 }
 0x83f   :  { %v337_v47 = vmul.f32 %v335_v45, %v326_v46 }
 0x841   :  { %339 = vrot.lane.b32.xlu0 %v337_v47, %s894_s24 }
 0x8b3   :  { %v340_v50 = vpop.permute.xlu0 %339 }
 0x8b4   :  { %v342_v51 = vadd.f32 %v340_v50, %v332_v49 }
 0x8b6   :  { %773 = vtanh.f32 %v342_v51  ;;  %v400_v16 = vrot.slane %v342_v51, 7 }
 0x8bc   :  { %v774_v52 = vpop.eup %773 }
 0x8bd   :  { %345 = vrot.lane.b32.xlu1 %v774_v52, %s895_s25 }
 0x92f   :  { %v346_v53 = vpop.permute.xlu1 %345 }
 0x930   :  { %v348_v54 = vmul.f32 %v346_v53, %v326_v46 }
 0x932   :  { %v350_v55 = vrot.slane %v348_v54, 3  ;;  %v634_v56 = vsel %vm633_vm4, %v632_v27, %v348_v54  ;;  %vm639_vm4 = vcmask 1045504  }
 0x934   :  { %351 = vrot.lane.b32.xlu2 %v350_v55, %s896_s26 }
 0x98e   :  { %v352_v57 = vpop.permute.xlu2 %351 }
 0x98f   :  { %722 = vmatmul.msk.f32.vlgmr.msrb.gmra.mxu1 %vm53_vm0, %v352_v57 }
 0xa0c   :  { %v372_v58 = vpop.f32.mrf.mxu1 }
 0xa0d   :  { %v376_v59 = vrot.slane %v372_v58, 4 }
 0xa0f   :  { %v378_v60 = vadd.f32 %v376_v59, %v946_v6 }
 0xa11   :  { %775 = vtanh.f32 %v378_v60  ;;  %v723_v62 = vmul.f32 -1.442695, %v378_v60 }
 0xa13   :  { %777 = vpow2.f32 %v723_v62 }
 0xa17   :  { %v776_v61 = vpop.eup %775 }
 0xa18   :  { %404 = vrot.lane.b32.xlu0 %v776_v61, %s893_s2 }
 0xa19   :  { %v778_v63 = vpop.eup %777 }
 0xa1a   :  { %v382_v2 = vadd.f32 1.0, %v778_v63 }
 0xa1c   :  { %779 = vrcp.f32 %v382_v2  ;;  %v394_v9 = vand.u32 2147483648, %v382_v2  ;;  %vm388_vm6 = vweird.f32 %v382_v2  ;;  %v392_v10 = vand.u32 2147483647, %v382_v2 }
 0xa1e   :  { %v395_v12 = vor.u32 1.1754944e-38, %v394_v9  ;;  %vm393_vm8 = vcmp.eq.f32.partialorder %v392_v10, 8.507059e+37 }
 0xa22   :  { %v780_v3 = vpop.eup %779 }
 0xa23   :  { %v384_v4 = vmul.f32 %v780_v3, %v382_v2  ;;  %vm389_vm5 = vweird.f32 %v780_v3 }
 0xa24   :  { %vm390_vm7 = vmor %vm388_vm6, %vm389_vm5 }
 0xa25   :  { %v385_v5 = vsub.f32 1.0, %v384_v4 }
 0xa27   :  { %v386_v7 = vmul.f32 %v780_v3, %v385_v5 }
 0xa29   :  { %v387_v8 = vadd.f32 %v780_v3, %v386_v7 }
 0xa2b   :  { %v391_v11 = vsel %vm390_vm7, %v780_v3, %v387_v8 }
 0xa2c   :  { %v396_v14 = vsel %vm393_vm8, %v395_v12, %v391_v11 }
 0xa2d   :  { %v402_v17 = vmul.f32 %v400_v16, %v396_v14 }
 0xa8a   :  { %v405_v13 = vpop.permute.xlu0 %404 }
 0xa8b   :  { %v407_v15 = vmul.f32 %v405_v13, %v396_v14 }
 0xa8d   :  { %409 = vrot.lane.b32.xlu1 %v407_v15, %s894_s24 }
 0xaff   :  { %v410_v18 = vpop.permute.xlu1 %409 }
 0xb00   :  { %v412_v19 = vadd.f32 %v410_v18, %v402_v17 }
 0xb02   :  { %781 = vtanh.f32 %v412_v19  ;;  %v470_v45 = vrot.slane %v412_v19, 7 }
 0xb08   :  { %v782_v20 = vpop.eup %781 }
 0xb09   :  { %415 = vrot.lane.b32.xlu2 %v782_v20, %s895_s25 }
 0xb63   :  { %v416_v21 = vpop.permute.xlu2 %415 }
 0xb64   :  { %v418_v22 = vmul.f32 %v416_v21, %v396_v14 }
 0xb66   :  { %v420_v23 = vrot.slane %v418_v22, 4  ;;  %v636_v24 = vsel %vm635_vm9, %v634_v56, %v418_v22  ;;  %vm641_vm9 = vcmask 1046528  }
 0xb68   :  { %421 = vrot.lane.b32.xlu0 %v420_v23, %s896_s26 }
 0xbda   :  { %v422_v25 = vpop.permute.xlu0 %421 }
 0xbdb   :  { %724 = vmatmul.msk.f32.vlgmr.msrb.gmra.mxu2 %vm53_vm0, %v422_v25 }
 0xc5e   :  { %v442_v26 = vpop.f32.mrf.mxu2 }
 0xc5f   :  { %v446_v27 = vrot.slane %v442_v26, 3 }
 0xc61   :  { %v448_v28 = vadd.f32 %v446_v27, %v946_v6 }
 0xc63   :  { %783 = vtanh.f32 %v448_v28  ;;  %v725_v31 = vmul.f32 -1.442695, %v448_v28 }
 0xc65   :  { %785 = vpow2.f32 %v725_v31 }
 0xc69   :  { %v784_v29 = vpop.eup %783 }
 0xc6a   :  { %474 = vrot.lane.b32.xlu1 %v784_v29, %s893_s2 }
 0xc6b   :  { %v786_v32 = vpop.eup %785 }
 0xc6c   :  { %v452_v33 = vadd.f32 1.0, %v786_v32 }
 0xc6e   :  { %787 = vrcp.f32 %v452_v33  ;;  %v464_v38 = vand.u32 2147483648, %v452_v33  ;;  %vm458_vm11 = vweird.f32 %v452_v33  ;;  %v462_v39 = vand.u32 2147483647, %v452_v33 }
 0xc70   :  { %v465_v41 = vor.u32 1.1754944e-38, %v464_v38  ;;  %vm463_vm13 = vcmp.eq.f32.partialorder %v462_v39, 8.507059e+37 }
 0xc74   :  { %v788_v34 = vpop.eup %787 }
 0xc75   :  { %v454_v35 = vmul.f32 %v788_v34, %v452_v33  ;;  %vm459_vm10 = vweird.f32 %v788_v34 }
 0xc76   :  { %vm460_vm12 = vmor %vm458_vm11, %vm459_vm10 }
 0xc77   :  { %v455_v36 = vsub.f32 1.0, %v454_v35 }
 0xc79   :  { %v456_v30 = vmul.f32 %v788_v34, %v455_v36 }
 0xc7b   :  { %v457_v37 = vadd.f32 %v788_v34, %v456_v30 }
 0xc7d   :  { %v461_v40 = vsel %vm460_vm12, %v788_v34, %v457_v37 }
 0xc7e   :  { %v466_v43 = vsel %vm463_vm13, %v465_v41, %v461_v40 }
 0xc7f   :  { %v472_v46 = vmul.f32 %v470_v45, %v466_v43 }
 0xcdc   :  { %v475_v42 = vpop.permute.xlu1 %474 }
 0xcdd   :  { %v477_v44 = vmul.f32 %v475_v42, %v466_v43 }
 0xcdf   :  { %479 = vrot.lane.b32.xlu2 %v477_v44, %s894_s24 }
 0xd39   :  { %v480_v47 = vpop.permute.xlu2 %479 }
 0xd3a   :  { %v482_v48 = vadd.f32 %v480_v47, %v472_v46 }
 0xd3c   :  { %789 = vtanh.f32 %v482_v48  ;;  %v540_v13 = vrot.slane %v482_v48, 7 }
 0xd42   :  { %v790_v49 = vpop.eup %789 }
 0xd43   :  { %485 = vrot.lane.b32.xlu0 %v790_v49, %s895_s25 }
 0xdb5   :  { %v486_v50 = vpop.permute.xlu0 %485 }
 0xdb6   :  { %v488_v51 = vmul.f32 %v486_v50, %v466_v43 }
 0xdb8   :  { %v490_v52 = vrot.slane %v488_v51, 5  ;;  %v638_v53 = vsel %vm637_vm14, %v636_v24, %v488_v51 }
 0xdba   :  { %491 = vrot.lane.b32.xlu1 %v490_v52, %s896_s26 }
 0xe2c   :  { %v492_v54 = vpop.permute.xlu1 %491 }
 0xe2d   :  { %726 = vmatmul.msk.f32.vlgmr.msrb.gmra.mxu3 %vm53_vm0, %v492_v54 }
 0xeb0   :  { %v512_v55 = vpop.f32.mrf.mxu3 }
 0xeb1   :  { %v516_v56 = vrot.slane %v512_v55, 2 }
 0xeb3   :  { %v518_v57 = vadd.f32 %v516_v56, %v946_v6 }
 0xeb5   :  { %791 = vtanh.f32 %v518_v57  ;;  %v727_v59 = vmul.f32 -1.442695, %v518_v57 }
 0xeb7   :  { %793 = vpow2.f32 %v727_v59 }
 0xebb   :  { %v792_v58 = vpop.eup %791 }
 0xebc   :  { %544 = vrot.lane.b32.xlu2 %v792_v58, %s893_s2 }
 0xebd   :  { %v794_v60 = vpop.eup %793 }
 0xebe   :  { %v522_v61 = vadd.f32 1.0, %v794_v60 }
 0xec0   :  { %795 = vrcp.f32 %v522_v61  ;;  %v534_v5 = vand.u32 2147483648, %v522_v61  ;;  %vm528_vm1 = vweird.f32 %v522_v61  ;;  %v532_v7 = vand.u32 2147483647, %v522_v61 }
 0xec2   :  { %v535_v9 = vor.u32 1.1754944e-38, %v534_v5  ;;  %vm533_vm3 = vcmp.eq.f32.partialorder %v532_v7, 8.507059e+37 }
 0xec6   :  { %v796_v62 = vpop.eup %795 }
 0xec7   :  { %v524_v63 = vmul.f32 %v796_v62, %v522_v61  ;;  %vm529_vm15 = vweird.f32 %v796_v62 }
 0xec8   :  { %vm530_vm2 = vmor %vm528_vm1, %vm529_vm15 }
 0xec9   :  { %v525_v2 = vsub.f32 1.0, %v524_v63 }
 0xecb   :  { %v526_v3 = vmul.f32 %v796_v62, %v525_v2 }
 0xecd   :  { %v527_v4 = vadd.f32 %v796_v62, %v526_v3 }
 0xecf   :  { %v531_v8 = vsel %vm530_vm2, %v796_v62, %v527_v4 }
 0xed0   :  { %v536_v11 = vsel %vm533_vm3, %v535_v9, %v531_v8 }
 0xed1   :  { %v542_v14 = vmul.f32 %v540_v13, %v536_v11 }
 0xf16   :  { %v545_v10 = vpop.permute.xlu2 %544 }
 0xf17   :  { %v547_v12 = vmul.f32 %v545_v10, %v536_v11 }
 0xf19   :  { %549 = vrot.lane.b32.xlu0 %v547_v12, %s894_s24 }
 0xf8b   :  { %v550_v15 = vpop.permute.xlu0 %549 }
 0xf8c   :  { %v552_v16 = vadd.f32 %v550_v15, %v542_v14 }
 0xf8e   :  { %797 = vtanh.f32 %v552_v16  ;;  %v610_v41 = vrot.slane %v552_v16, 7 }
 0xf94   :  { %v798_v17 = vpop.eup %797 }
 0xf95   :  { %555 = vrot.lane.b32.xlu1 %v798_v17, %s895_s25 }
0x1007   :  { %v556_v18 = vpop.permute.xlu1 %555 }
0x1008   :  { %v558_v19 = vmul.f32 %v556_v18, %v536_v11 }
0x100a   :  { %v560_v20 = vrot.slane %v558_v19, 6  ;;  %v640_v21 = vsel %vm639_vm4, %v638_v53, %v558_v19 }
0x100c   :  { %561 = vrot.lane.b32.xlu2 %v560_v20, %s896_s26 }
0x1066   :  { %v562_v22 = vpop.permute.xlu2 %561 }
0x1067   :  { %728 = vmatmul.msk.f32.vlgmr.msra.gmra.mxu0 %vm53_vm0, %v562_v22 }
0x10e4   :  { %v582_v23 = vpop.f32.mrf.mxu0 }
0x10e5   :  { %v586_v24 = vrot.slane %v582_v23, 1 }
0x10e7   :  { %v588_v25 = vadd.f32 %v586_v24, %v946_v6 }
0x10e9   :  { %799 = vtanh.f32 %v588_v25  ;;  %v729_v27 = vmul.f32 -1.442695, %v588_v25 }
0x10eb   :  { %801 = vpow2.f32 %v729_v27 }
0x10ef   :  { %v800_v26 = vpop.eup %799 }
0x10f0   :  { %614 = vrot.lane.b32.xlu0 %v800_v26, %s893_s2 }
0x10f1   :  { %v802_v28 = vpop.eup %801 }
0x10f2   :  { %v592_v29 = vadd.f32 1.0, %v802_v28 }
0x10f4   :  { %803 = vrcp.f32 %v592_v29  ;;  %v604_v36 = vand.u32 2147483648, %v592_v29  ;;  %vm598_vm6 = vweird.f32 %v592_v29  ;;  %v602_v30 = vand.u32 2147483647, %v592_v29 }
0x10f6   :  { %v605_v37 = vor.u32 1.1754944e-38, %v604_v36  ;;  %vm603_vm8 = vcmp.eq.f32.partialorder %v602_v30, 8.507059e+37 }
0x10f8   :  { %646 = vrot.lane.b32.xlu0 %v925_v0, %s897_s27 }
0x10fa   :  { %v804_v31 = vpop.eup %803 }
0x10fb   :  { %v594_v32 = vmul.f32 %v804_v31, %v592_v29  ;;  %vm599_vm5 = vweird.f32 %v804_v31 }
0x10fc   :  { %vm600_vm7 = vmor %vm598_vm6, %vm599_vm5 }
0x10fd   :  { %v595_v33 = vsub.f32 1.0, %v594_v32 }
0x10ff   :  { %v596_v34 = vmul.f32 %v804_v31, %v595_v33 }
0x1101   :  { %v597_v35 = vadd.f32 %v804_v31, %v596_v34 }
0x1103   :  { %v601_v6 = vsel %vm600_vm7, %v804_v31, %v597_v35 }
0x1104   :  { %v606_v39 = vsel %vm603_vm8, %v605_v37, %v601_v6 }
0x1105   :  { %v612_v42 = vmul.f32 %v610_v41, %v606_v39 }
0x1162   :  { %v615_v38 = vpop.permute.xlu0 %614 }
0x1163   :  { %v617_v40 = vmul.f32 %v615_v38, %v606_v39 }
0x1165   :  { %619 = vrot.lane.b32.xlu1 %v617_v40, %s894_s24 }
0x116a   :  { %v647_v46 = vpop.permute.xlu0 %646 }
0x116b   :  { %669 = vmatpush.msra.mxu1 %v647_v46 }
0x11d7   :  { %v620_v43 = vpop.permute.xlu1 %619 }
0x11d8   :  { %v622_v44 = vadd.f32 %v620_v43, %v612_v42 }
0x11da   :  { %805 = vtanh.f32 %v622_v44 }
0x11e0   :  { %v806_v45 = vpop.eup %805 }
0x11e1   :  { %625 = vrot.lane.b32.xlu2 %v806_v45, %s895_s25 }
0x11e9   :  { %649 = vrot.lane.b32.xlu2 %v938_v1, %s891_s0 }
0x123b   :  { %v626_v47 = vpop.permute.xlu2 %625 }
0x123c   :  { %v628_v48 = vmul.f32 %v626_v47, %v606_v39 }
0x123e   :  { %v642_v0 = vsel %vm641_vm9, %v640_v21, %v628_v48 }
0x123f   :  { %644 = vrot.lane.b32.xlu1 %v642_v0, %s896_s26 }
0x1243   :  { %v650_v50 = vpop.permute.xlu2 %649 }
0x12b1   :  { %v645_v49 = vpop.permute.xlu1 %644 }
0x12b2   :  { %730 = vmatmul.msk.f32.vlgmr.msra.gmra.mxu1 %vm53_vm0, %v645_v49 }
0x132f   :  { %v671_v51 = vpop.f32.mrf.mxu1 }
0x1330   :  { %v672_v52 = vadd.f32 %v671_v51, %v650_v50 }
0x1332   :  { %v731_v53 = vmul.f32 -1.442695, %v672_v52 }
0x1334   :  { %807 = vpow2.f32 %v731_v53 }
0x133a   :  { %v808_v54 = vpop.eup %807 }
0x133b   :  { %v677_v55 = vadd.f32 1.0, %v808_v54 }
0x133d   :  { %809 = vrcp.f32 %v677_v55  ;;  %v689_v58 = vand.u32 2147483648, %v677_v55  ;;  %v687_v60 = vand.u32 2147483647, %v677_v55  ;;  %vm683_vm11 = vweird.f32 %v677_v55 }
0x133f   :  { %v690_v62 = vor.u32 1.1754944e-38, %v689_v58  ;;  %vm688_vm13 = vcmp.eq.f32.partialorder %v687_v60, 8.507059e+37 }
0x1343   :  { %v810_v1 = vpop.eup %809 }
0x1344   :  { %v679_v56 = vmul.f32 %v810_v1, %v677_v55  ;;  %vm684_vm10 = vweird.f32 %v810_v1 }
0x1345   :  { %vm685_vm12 = vmor %vm683_vm11, %vm684_vm10 }
0x1346   :  { %v680_v57 = vsub.f32 1.0, %v679_v56 }
0x1348   :  { %v681_v59 = vmul.f32 %v810_v1, %v680_v57 }
0x134a   :  { %v682_v61 = vadd.f32 %v810_v1, %v681_v59 }
0x134c   :  { %v686_v63 = vsel %vm685_vm12, %v810_v1, %v682_v61 }
0x134d   :  { %v691_v2 = vsel %vm688_vm13, %v690_v62, %v686_v63 }
0x134e   :  { %v693_v3 = vmul.f32 2.0, %v691_v2 }
0x1350   :  { %694 = vst.msk [vmem:[#allocation7] sm:$0xff] %vm53_vm0, %v693_v3 }
0x1351   :  { %705 = dma.vmem_to_hbm [thread:$0]  %s701_s29, 128, %s703_s5, [#allocation4]  }
0x1352   :  { %887 = dma.done.wait [#allocation4], 128  }
0x1353   :  { %888 = vsyncadd [#allocation4], 4294967168 }
0x1354   :  { %710 = vsyncpa [#allocation3], 1 }
0x1355   :  { %711 = vsyncpa [#allocation6], 1 }
0x1356   :  { %712 = vsyncpa [#allocation4], 1 }

</bundles_post_ra>
